<compile_context>
chip_gen: v6e
topology: v6e:2x2x1
jax: 0.10.0
libtpu: 0.0.40
codegen_flags: <defaults>
</compile_context>

<pallas_src>
import math

import jax
import jax.numpy as jnp
from jax.experimental import pallas as pl
from jax.experimental.pallas import tpu as pltpu

_INV_SQRT2 = 1.0 / math.sqrt(2.0)


def _round_up(a, b):
    return (a + b - 1) // b * b


def _gelu_exact(h):
    # Exact (erf-based) GELU; matches PyTorch nn.GELU default.
    # TODO(synk): switch to tanh-approx GELU (EUP) if the model tolerates ~1e-3 drift.
    return 0.5 * h * (1.0 + jax.lax.erf(h * _INV_SQRT2))


def mlp_kernel_single(x_ref, w1_ref, b1_ref, w2_ref, b2_ref, o_ref):
    """Whole hidden dim in one slab: no accumulator needed."""
    h = jnp.dot(x_ref[...], w1_ref[...], preferred_element_type=jnp.float32)
    h = _gelu_exact(h + b1_ref[...])
    # dropout p=0.0 -> identity.
    o_ref[...] = (jnp.dot(h.astype(w2_ref.dtype), w2_ref[...],
                          preferred_element_type=jnp.float32)
                  + b2_ref[...]).astype(o_ref.dtype)


def mlp_kernel_acc(x_ref, w1_ref, b1_ref, w2_ref, b2_ref, o_ref, acc_ref):
    """Hidden dim split into slabs; f32 accumulator lives across the k axis."""
    k = pl.program_id(1)

    @pl.when(k == 0)
    def _init():
        acc_ref[...] = jnp.zeros_like(acc_ref)

    # fc1 slab: [tile_m, D_in] @ [D_in, tile_h] + b1 slab, then GELU.
    h = jnp.dot(x_ref[...], w1_ref[...], preferred_element_type=jnp.float32)
    h = _gelu_exact(h + b1_ref[...])
    # dropout p=0.0 -> identity.
    # fc2 partial product for this hidden slab, accumulated in f32 VMEM scratch.
    acc_ref[...] += jnp.dot(h.astype(w2_ref.dtype), w2_ref[...],
                            preferred_element_type=jnp.float32)

    @pl.when(k == pl.num_programs(1) - 1)
    def _finalize():
        o_ref[...] = (acc_ref[...] + b2_ref[...]).astype(o_ref.dtype)


def mlp_pallas(x, w1, b1, w2, b2, *, tile_m=256, tile_h=512,
               compute_dtype=jnp.bfloat16):
    """x: [M, D_in]; w1: [D_in, D_h]; b1: [D_h]; w2: [D_h, D_out]; b2: [D_out]."""
    M, D_in = x.shape
    D_h = w1.shape[1]
    D_out = w2.shape[1]
    out_dtype = x.dtype
    if compute_dtype is None:
        compute_dtype = x.dtype

    # Lane-dense feature dims (multiples of 128).  Zero padding is exact.
    D_in_p = _round_up(D_in, 128)
    D_h_p = _round_up(D_h, 128)
    D_out_p = _round_up(D_out, 128)

    tile_h = min(tile_h, D_h_p)
    D_h_p = _round_up(D_h_p, tile_h)

    # Row tiling: multiple of 8; ensure >= 2 row blocks whenever M allows so
    # the pipeline has >1 step and both v7x TensorCores get work.
    M8 = _round_up(M, 8)
    tile_m = min(tile_m, M8)
    if M8 // tile_m < 2 and M8 >= 16:
        tile_m = _round_up(M8 // 2, 8)
    M_p = _round_up(M, tile_m)

    # Pad + cast operands (biases stay f32; they are added to f32 values).
    xp = jnp.pad(x, ((0, M_p - M), (0, D_in_p - D_in))).astype(compute_dtype)
    w1p = jnp.pad(w1, ((0, D_in_p - D_in), (0, D_h_p - D_h))).astype(compute_dtype)
    w2p = jnp.pad(w2, ((0, D_h_p - D_h), (0, D_out_p - D_out))).astype(compute_dtype)
    b1p = jnp.pad(b1, (0, D_h_p - D_h)).astype(jnp.float32).reshape(1, D_h_p)
    b2p = jnp.pad(b2, (0, D_out_p - D_out)).astype(jnp.float32).reshape(1, D_out_p)

    grid_m = M_p // tile_m
    grid_k = D_h_p // tile_h

    comp_bytes = jnp.dtype(compute_dtype).itemsize
    out_bytes = jnp.dtype(out_dtype).itemsize

    # Rough double-buffered VMEM footprint -> explicit scoped-VMEM limit
    # (capped at 64 MiB so the same config also works on v7x's smaller VMEM).
    vmem_need = (2 * tile_m * D_in_p * comp_bytes
                 + 2 * (D_in_p * tile_h + tile_h * D_out_p) * comp_bytes
                 + 2 * (tile_h + D_out_p) * 4
                 + 2 * tile_m * D_out_p * out_bytes
                 + tile_m * D_out_p * 4)
    vmem_limit = int(min(max(2 * vmem_need, 32 * 1024 * 1024), 64 * 1024 * 1024))

    cost = pl.CostEstimate(
        flops=2 * M_p * D_in_p * D_h_p + 2 * M_p * D_h_p * D_out_p,
        transcendentals=M_p * D_h_p,
        bytes_accessed=(xp.size * comp_bytes + w1p.size * comp_bytes
                        + w2p.size * comp_bytes + b1p.size * 4 + b2p.size * 4
                        + M_p * D_out_p * out_bytes),
    )

    if grid_k == 1:
        # Fast path: one hidden slab -> single-pass kernel, no scratch.
        grid_spec = pltpu.PrefetchScalarGridSpec(
            num_scalar_prefetch=0,
            grid=(grid_m,),
            in_specs=[
                pl.BlockSpec((tile_m, D_in_p), lambda i: (i, 0)),   # x row tile
                pl.BlockSpec((D_in_p, D_h_p), lambda i: (0, 0)),    # w1 (resident)
                pl.BlockSpec((1, D_h_p), lambda i: (0, 0)),         # b1
                pl.BlockSpec((D_h_p, D_out_p), lambda i: (0, 0)),   # w2 (resident)
                pl.BlockSpec((1, D_out_p), lambda i: (0, 0)),       # b2
            ],
            out_specs=pl.BlockSpec((tile_m, D_out_p), lambda i: (i, 0)),
        )
        kernel = mlp_kernel_single
        dim_sem = ("parallel",)
    else:
        grid_spec = pltpu.PrefetchScalarGridSpec(
            num_scalar_prefetch=0,
            grid=(grid_m, grid_k),
            in_specs=[
                pl.BlockSpec((tile_m, D_in_p), lambda i, k: (i, 0)),   # x row tile
                pl.BlockSpec((D_in_p, tile_h), lambda i, k: (0, k)),   # w1 hidden slab
                pl.BlockSpec((1, tile_h), lambda i, k: (0, k)),        # b1 slab
                pl.BlockSpec((tile_h, D_out_p), lambda i, k: (k, 0)),  # w2 hidden slab
                pl.BlockSpec((1, D_out_p), lambda i, k: (0, 0)),       # b2
            ],
            out_specs=pl.BlockSpec((tile_m, D_out_p), lambda i, k: (i, 0)),
            scratch_shapes=[pltpu.VMEM((tile_m, D_out_p), jnp.float32)],
        )
        kernel = mlp_kernel_acc
        dim_sem = ("parallel", "arbitrary")

    out_p = pl.pallas_call(
        kernel,
        out_shape=jax.ShapeDtypeStruct((M_p, D_out_p), out_dtype),
        grid_spec=grid_spec,
        compiler_params=pltpu.CompilerParams(
            dimension_semantics=dim_sem,
            vmem_limit_bytes=vmem_limit,
        ),
        cost_estimate=cost,
    )(xp, w1p, b1p, w2p, b2p)

    return out_p[:M, :D_out]


def mlp_reference(x, w1, b1, w2, b2):
    h = x @ w1 + b1
    h = 0.5 * h * (1.0 + jax.lax.erf(h * _INV_SQRT2))
    return h @ w2 + b2


if __name__ == "__main__":
    # Shapes implied by the module: tokens x features MLP.
    batch, seq = 2, 8
    in_features, hidden_features, out_features = 32, 64, 32
    M = batch * seq

    key = jax.random.PRNGKey(0)
    kx, kw1, kb1, kw2, kb2 = jax.random.split(key, 5)

    x = jax.random.normal(kx, (M, in_features), dtype=jnp.float32)
    # Deterministic synthetic parameters (PyTorch Linear-like scale).
    w1 = jax.random.uniform(kw1, (in_features, hidden_features),
                            minval=-1.0, maxval=1.0,
                            dtype=jnp.float32) / math.sqrt(in_features)
    b1 = jax.random.uniform(kb1, (hidden_features,),
                            minval=-1.0, maxval=1.0,
                            dtype=jnp.float32) / math.sqrt(in_features)
    w2 = jax.random.uniform(kw2, (hidden_features, out_features),
                            minval=-1.0, maxval=1.0,
                            dtype=jnp.float32) / math.sqrt(hidden_features)
    b2 = jax.random.uniform(kb2, (out_features,),
                            minval=-1.0, maxval=1.0,
                            dtype=jnp.float32) / math.sqrt(hidden_features)

    out = mlp_pallas(x, w1, b1, w2, b2)
    out = jax.block_until_ready(out)

    ref = mlp_reference(x, w1, b1, w2, b2)
    assert out.shape == (M, out_features)
    # bf16 operands with f32 accumulation -> loosened tolerance vs f32 reference.
    assert jnp.allclose(out, ref, atol=2e-2, rtol=2e-2), "mismatch vs reference"

    # Also exercise the multi-slab (accumulator) path at small scale.
    out2 = mlp_pallas(x, w1, b1, w2, b2, tile_h=128)
    out2 = jax.block_until_ready(out2)
    assert jnp.allclose(out2, ref, atol=2e-2, rtol=2e-2), "mismatch (acc path)"

    print("KERNEL_OK")
</pallas_src>

<mosaic_0001>
module attributes {stable_mosaic.version = 11 : i64} {
  func.func @mlp_kernel_single(%arg0: i32, %arg1: memref<8x128xbf16, #tpu.memory_space<vmem>>, %arg2: memref<128x128xbf16, #tpu.memory_space<vmem>>, %arg3: memref<1x128xf32, #tpu.memory_space<vmem>>, %arg4: memref<128x128xbf16, #tpu.memory_space<vmem>>, %arg5: memref<1x128xf32, #tpu.memory_space<vmem>>, %arg6: memref<8x128xf32, #tpu.memory_space<vmem>>) attributes {dimension_semantics = [#tpu.dimension_semantics<parallel>], iteration_bounds = array<i64: 2>, scalar_prefetch = 0 : i64, scratch_operands = 0 : i64, tpu.core_type = #tpu.core_type<tc>, window_params = [{transform_indices = @transform_0, window_bounds = array<i64: 8, 128>}, {pipeline_mode = #tpu.pipeline_mode<synchronous>, transform_indices = @transform_1, window_bounds = array<i64: 128, 128>}, {pipeline_mode = #tpu.pipeline_mode<synchronous>, transform_indices = @transform_2, window_bounds = array<i64: 1, 128>}, {pipeline_mode = #tpu.pipeline_mode<synchronous>, transform_indices = @transform_3, window_bounds = array<i64: 128, 128>}, {pipeline_mode = #tpu.pipeline_mode<synchronous>, transform_indices = @transform_4, window_bounds = array<i64: 1, 128>}, {transform_indices = @transform_5, window_bounds = array<i64: 8, 128>}]} {
    %c0 = arith.constant 0 : index
    %c0_0 = arith.constant 0 : index
    %0 = vector.load %arg1[%c0, %c0_0] : memref<8x128xbf16, #tpu.memory_space<vmem>>, vector<8x128xbf16>
    %c0_1 = arith.constant 0 : index
    %c0_2 = arith.constant 0 : index
    %1 = vector.load %arg2[%c0_1, %c0_2] : memref<128x128xbf16, #tpu.memory_space<vmem>>, vector<128x128xbf16>
    %cst = arith.constant dense<0.000000e+00> : vector<8x128xf32>
    %2 = tpu.matmul %0, %1, %cst {dimension_numbers = #tpu.dot_dimension_numbers<[1], [0], [0], [1], [0, 0, 1, 1], [], []>} : vector<8x128xbf16>, vector<128x128xbf16>, vector<8x128xf32> -> vector<8x128xf32>
    %c0_3 = arith.constant 0 : index
    %c0_4 = arith.constant 0 : index
    %3 = vector.load %arg3[%c0_3, %c0_4] : memref<1x128xf32, #tpu.memory_space<vmem>>, vector<1x128xf32>
    %4 = vector.broadcast %3 : vector<1x128xf32> to vector<8x128xf32>
    %5 = arith.addf %2, %4 : vector<8x128xf32>
    %cst_5 = arith.constant 5.000000e-01 : f32
    %6 = vector.broadcast %cst_5 : f32 to vector<8x128xf32>
    %7 = arith.mulf %6, %5 : vector<8x128xf32>
    %cst_6 = arith.constant 0.707106769 : f32
    %8 = vector.broadcast %cst_6 : f32 to vector<8x128xf32>
    %9 = arith.mulf %5, %8 : vector<8x128xf32>
    %10 = math.erf %9 : vector<8x128xf32>
    %cst_7 = arith.constant 1.000000e+00 : f32
    %11 = vector.broadcast %cst_7 : f32 to vector<8x128xf32>
    %12 = arith.addf %11, %10 : vector<8x128xf32>
    %13 = arith.mulf %7, %12 : vector<8x128xf32>
    %14 = arith.truncf %13 : vector<8x128xf32> to vector<8x128xbf16>
    %c0_8 = arith.constant 0 : index
    %c0_9 = arith.constant 0 : index
    %15 = vector.load %arg4[%c0_8, %c0_9] : memref<128x128xbf16, #tpu.memory_space<vmem>>, vector<128x128xbf16>
    %cst_10 = arith.constant dense<0.000000e+00> : vector<8x128xf32>
    %16 = tpu.matmul %14, %15, %cst_10 {dimension_numbers = #tpu.dot_dimension_numbers<[1], [0], [0], [1], [0, 0, 1, 1], [], []>} : vector<8x128xbf16>, vector<128x128xbf16>, vector<8x128xf32> -> vector<8x128xf32>
    %c0_11 = arith.constant 0 : index
    %c0_12 = arith.constant 0 : index
    %17 = vector.load %arg5[%c0_11, %c0_12] : memref<1x128xf32, #tpu.memory_space<vmem>>, vector<1x128xf32>
    %18 = vector.broadcast %17 : vector<1x128xf32> to vector<8x128xf32>
    %19 = arith.addf %16, %18 : vector<8x128xf32>
    %c0_13 = arith.constant 0 : index
    %c0_14 = arith.constant 0 : index
    %20 = vector.load %arg6[%c0_13, %c0_14] : memref<8x128xf32, #tpu.memory_space<vmem>>, vector<8x128xf32>
    tpu.vector_store %arg6[%c0_13, %c0_14], %19 {strides = array<i32>} : memref<8x128xf32, #tpu.memory_space<vmem>>, vector<8x128xf32>,
    return
  }
  func.func @transform_0(%arg0: i32) -> (i32, i32) {
    %c0_i32 = arith.constant 0 : i32
    %c0_i32_0 = arith.constant 0 : i32
    return %arg0, %c0_i32 : i32, i32
  }
  func.func @transform_1(%arg0: i32) -> (i32, i32) {
    %c0_i32 = arith.constant 0 : i32
    %c0_i32_0 = arith.constant 0 : i32
    %c0_i32_1 = arith.constant 0 : i32
    return %c0_i32, %c0_i32_0 : i32, i32
  }
  func.func @transform_2(%arg0: i32) -> (i32, i32) {
    %c0_i32 = arith.constant 0 : i32
    %c0_i32_0 = arith.constant 0 : i32
    %c0_i32_1 = arith.constant 0 : i32
    return %c0_i32, %c0_i32_0 : i32, i32
  }
  func.func @transform_3(%arg0: i32) -> (i32, i32) {
    %c0_i32 = arith.constant 0 : i32
    %c0_i32_0 = arith.constant 0 : i32
    %c0_i32_1 = arith.constant 0 : i32
    return %c0_i32, %c0_i32_0 : i32, i32
  }
  func.func @transform_4(%arg0: i32) -> (i32, i32) {
    %c0_i32 = arith.constant 0 : i32
    %c0_i32_0 = arith.constant 0 : i32
    %c0_i32_1 = arith.constant 0 : i32
    return %c0_i32, %c0_i32_0 : i32, i32
  }
  func.func @transform_5(%arg0: i32) -> (i32, i32) {
    %c0_i32 = arith.constant 0 : i32
    %c0_i32_0 = arith.constant 0 : i32
    return %arg0, %c0_i32 : i32, i32
  }
}

</mosaic_0001>

<bundles_post_ra>
// kernel: tpu_custom_call.1
= control target key start
LH: loop header
LB: loop body
LE: loop exit
PB: predicated region body
PF: predicated region fallthrough
CT: control target
= control target key end

     0   :  { %10 = vsyncpa [#allocation3], 0  ;;  %s1159_s0 = inlined_call_operand.hbm [shape: bf16[16,128], index: 0, kind: input, shape index: {}]   ;;  %s1160_s1 = inlined_call_operand.hbm [shape: bf16[128,128], index: 1, kind: input, shape index: {}]   ;;  %s1161_s2 = inlined_call_operand.vmem [shape: f32[1,128], index: 2, kind: input, shape index: {}]   ;;  %s1162_s3 = inlined_call_operand.hbm [shape: bf16[128,128], index: 3, kind: input, shape index: {}]   ;;  %s1163_s4 = inlined_call_operand.vmem [shape: f32[1,128], index: 4, kind: input, shape index: {}]   ;;  %s1164_s5 = inlined_call_operand.hbm [shape: f32[16,128], index: 5, kind: output, shape index: {}]  }
   0x1   :  { %12 = vsyncpa [#allocation3 + $0x1], 0 }
   0x2   :  { %13 = vsyncpa [#allocation6], 0 }
   0x3   :  { %14 = vsyncpa [#allocation4], 0 }
   0x4   :  { %16 = vsyncpa [#allocation4 + $0x1], 0  ;;  %s972_s18 = smov 0   ;;  %s974_s19 = smov 0  }
   0x5   :  { %s976_s20 = smov 0   ;;  %s978_s21 = smov 0  }
   0x6 LB: > { %s993_s22 = sadd.s32 4294967295, %s932_s21   ;;  %s603_s23 = sadd.s32 4294967294, %s932_s21   ;;  %s932_s21 = sphi %s978_s21, %s1186_s21   ;;  %s928_s20 = sphi %s976_s20, %s1185_s20   ;;  %s924_s19 = sphi %s974_s19, %s1184_s19   ;;  %s920_s18 = sphi %s972_s18, %s1183_s18  }
   0x7   : > { %p42_p0 = scmp.ne.s32.totalorder %s924_s19, %s920_s18  ;;  %p1165_p1 = scmp.eq.s32.totalorder %s993_s22, 0 }
   0x8   : > { %p156_p3 = scmp.eq.s32.totalorder %s603_s23, 1  ;;  %p604_p5 = scmp.ge.s32.totalorder %s932_s21, 1 }
   0x9   : > { %p1002_p4 = por %p1165_p1, %p42_p0  ;;  %p163_p7 = scmp.lt.s32.totalorder %s932_s21, 3 }
   0xa   : > { %p1007_p6 = por %p156_p3, %p42_p0  ;;  %s934_s27 = smov [#allocation5]  }
   0xb   : > { %s1169_s24 = scalar_select %p1002_p4, 1, 0 }
   0xc   : > { %s1170_s25 = scalar_select %p1007_p6, 1, 0 }
   0xd   : > { %p1012_p8 = pnand %p604_p5, %p163_p7  ;;  %s175_s28 = sshll.u32 %s934_s27, 4  ;;  %s176_s28 = int_to_ptr.vmem [resolvable:$true] %s175_s28 }
   0xe   : > { %s935_s30 = smov [#allocation7]   ;;  %s795_s7 = scalar_lea.vmem %s176_s28, 1024 }
   0xf   : > { %s1171_s26 = scalar_select %p1012_p8, 1, 0 }
  0x10   : > { %p707_p9 = pneg %p1012_p8  ;;  %s191_s6 = sshll.u32 %s935_s30, 4  ;;  %s192_s6 = int_to_ptr.vmem [resolvable:$true] %s191_s6 }
  0x11   : > { %p796_p13 = scmp.ne.s32.totalorder %s176_s28, %s795_s7  ;;  %p803_p5 = scmp.lt.s32.totalorder %s176_s28, %s176_s28 }
  0x12   : > { %p1021_p11 = pnand %p707_p9, %p1165_p1  ;;  %p804_p7 = scmp.lt.s32.totalorder %s795_s7, %s795_s7 }
  0x14   : > { %p786_p12 = pneg %p1021_p11  ;;  %p805_p10 = por %p804_p7, %p803_p5 }
  0x16   : > { %p798_p0 = pnand %p796_p13, %p786_p12 }
  0x18   : > { %p799_p3 = pneg %p798_p0 }
  0x1a   : > { %p806_p9 = pnand %p805_p10, %p799_p3 }
  0x1c   : > { %809 = shalt.err (!%p806_p9)
}
  0x1d   : > { %s936_s8 = smov 64   ;;  %s937_s9 = smov 4  }
  0x1e   : > { %710 = dma.hbm_to_vmem [thread:$0]  (!%p1021_p11), %s1160_s1, 1024, %s176_s28, [#allocation6], %s936_s8, %s936_s8, %s937_s9  }
  0x1f   : > { %s821_s12 = scalar_lea.vmem %s192_s6, 1024  ;;  %p829_p2 = scmp.lt.s32.totalorder %s192_s6, %s192_s6 }
  0x20   : > { %p822_p1 = scmp.ne.s32.totalorder %s192_s6, %s821_s12  ;;  %p830_p6 = scmp.lt.s32.totalorder %s821_s12, %s821_s12 }
  0x22   : > { %p824_p13 = pnand %p822_p1, %p786_p12  ;;  %p831_p5 = por %p830_p6, %p829_p2 }
  0x24   : > { %p825_p0 = pneg %p824_p13 }
  0x26   : > { %p832_p10 = pnand %p831_p5, %p825_p0 }
  0x28   : > { %835 = shalt.err (!%p832_p10)
}
  0x29   : > { %713 = dma.hbm_to_vmem [thread:$0]  (!%p1021_p11), %s1162_s3, 1024, %s192_s6, [#allocation6], %s936_s8, %s936_s8, %s937_s9  }
  0x2a   : > { %s1044_s15 = sadd.s32 1, %s932_s21   ;;  %s29_s16 = sadd.s32 1, %s928_s20 }
  0x2b   : > { %s26_s17 = ssub.s32 %s932_s21, %s1044_s15  ;;  %p36_p1 = scmp.ne.s32.totalorder %s928_s20, %s924_s19 }
  0x2c   : > { %p27_p2 = scmp.eq.s32.totalorder %s26_s17, 0  ;;  %p37_p6 = scmp.eq.s32.totalorder %s932_s21, 0 }
  0x2d   : > { %p1173_p12 = scmp.eq.s32.totalorder %s993_s22, 1  ;;  %p724_p7 = scmp.lt.s32.totalorder %s932_s21, 2 }
  0x2e   : > { %s1060_s27 = scalar_select %p27_p2, %s928_s20, %s29_s16  }
  0x2f   : > { %p1054_p3 = por %p1173_p12, %p36_p1  ;;  %p38_p9 = por %p37_p6, %p36_p1 }
  0x30   : > { %s208_s28 = sand.u32 1, %s928_s20   ;;  %s609_s30 = sshll.u32 %s932_s21, 6 }
  0x31   : > { %s1174_s23 = scalar_select %p1054_p3, 1, 0 }
  0x32   : > { %s608_s29 = sshll.u32 %s208_s28, 2  ;;  %s1067_s8 = scalar_lea.hbm %s1159_s0, %s609_s30 }
  0x33   : > { %s212_s9 = scalar_lea.vmem [#allocation2], %s608_s29  ;;  %p1069_p11 = pnand %p724_p7, %p38_p9 }
  0x34   : > { %s219_s10 = sshll.u32 %s212_s9, 4  ;;  %s209_s12 = scalar_lea.sflag [#allocation3], %s208_s28  ;;  %s220_s10 = int_to_ptr.vmem [resolvable:$true] %s219_s10 }
  0x35   : > { %s836_s13 = scalar_lea.hbm %s1067_s8, 64  ;;  %p838_p0 = pneg %p1069_p11 }
  0x36   : > { %p837_p13 = scmp.ne.s32.totalorder %s1067_s8, %s836_s13  ;;  %s841_s17 = scalar_lea.hbm %s1159_s0, 128 }
  0x37   : > { %p842_p1 = scmp.lt.s32.totalorder %s1067_s8, %s1159_s0  ;;  %p843_p2 = scmp.lt.s32.totalorder %s841_s17, %s836_s13 }
  0x38   : > { %p839_p5 = pnand %p838_p0, %p837_p13 }
  0x39   : > { %p844_p6 = por %p843_p2, %p842_p1 }
  0x3a   : > { %p840_p10 = pneg %p839_p5 }
  0x3c   : > { %p845_p12 = pnand %p844_p6, %p840_p10 }
  0x3e   : > { %848 = shalt.err (!%p845_p12)
}
  0x3f   : > { %s849_s6 = scalar_lea.vmem %s220_s10, 64  ;;  %s938_s28 = smov [#allocation2]  }
  0x40   : > { %p850_p7 = scmp.ne.s32.totalorder %s220_s10, %s849_s6  ;;  %s854_s7 = sshll.u32 %s938_s28, 4  ;;  %s855_s7 = int_to_ptr.vmem [resolvable:$false] %s854_s7 }
  0x41   : > { %s856_s9 = scalar_lea.vmem %s855_s7, 128  ;;  %p857_p13 = scmp.lt.s32.totalorder %s220_s10, %s855_s7 }
  0x42   : > { %p852_p9 = pnand %p850_p7, %p838_p0  ;;  %p858_p5 = scmp.lt.s32.totalorder %s856_s9, %s849_s6 }
  0x44   : > { %p853_p3 = pneg %p852_p9  ;;  %p859_p4 = por %p858_p5, %p857_p13 }
  0x46   : > { %p860_p8 = pnand %p859_p4, %p853_p3 }
  0x48   : > { %863 = shalt.err (!%p860_p8)
}
  0x49   : > { %717 = dma.hbm_to_vmem [thread:$0]  (!%p1069_p11), %s1067_s8, 64, %s220_s10, %s209_s12  }
  0x4a   : > { %p1176_p10 = scmp.ne.s32.totalorder %s1171_s26, 0 }
  0x4b   : > { %s1090_s13 = sand.u32 (!%p1176_p10), 1, %s924_s19   ;;  %p1177_p0 = scmp.ne.s32.totalorder (!%p1176_p10), %s1169_s24, 0 }
  0x4c   : > { %228 = sbr.rel (%p1176_p10) target bundleno = 545 (0x221), region = 40  ;;  %s611_s14 = sshll.u32 (!%p1176_p10), %s1090_s13, 2 }
  0x4d   : > { %s231_s16 = scalar_lea.sflag (!%p1176_p10), [#allocation3], %s1090_s13  ;;  %s1094_s17 = scalar_lea.vmem (!%p1176_p10), [#allocation2], %s611_s14 }
  0x51   : > { %907 = dma.done.wait (%p1177_p0), %s231_s16, 64  }
  0x52   : > { %909 = vsyncadd (%p1177_p0), %s231_s16, 4294967232  ;;  %p1178_p4 = scmp.eq.s32.totalorder %s993_s22, 0 }
  0x54   : > { %911 = dma.done.wait (%p1178_p4), [#allocation6], 2048   ;;  %p1179_p8 = pmov %p1178_p4 }
  0x55   : > { %v939_v0 = vmov 0.0   ;;  %vm940_vm0 = vmmov 0   ;;  %v766_v1 = vld [vmem:[#allocation5 + $0x38] sm:$0xff]   ;;  %v767_v2 = vld [vmem:[#allocation5 + $0x30] sm:$0xff]   ;;  %v768_v3 = vld [vmem:[#allocation5 + $0x28] sm:$0xff]   ;;  %s614_s8 = sshll.u32 %s1090_s13, 3 }
  0x56   : > { %913 = vsyncadd (%p1179_p8), [#allocation6], 4294965248  ;;  %655 = vmatprep.subr.bf16.mxu0 %v939_v0  ;;  %671 = vmatprep.mubr.msk.bf16.mxu0 %vm940_vm0, %v939_v0  ;;  %v774_v4 = vld [vmem:[#allocation7 + $0x38] sm:$0xff]   ;;  %v769_v5 = vld [vmem:[#allocation5 + $0x20] sm:$0xff]   ;;  %s634_s12 = sshll.u32 %s993_s22, 7  ;;  %s268_s30 = scalar_lea.vmem [#allocation8], %s614_s8 }
  0x57   : > { %675 = vmatprep.subr.bf16.mxu1 %v939_v0  ;;  %691 = vmatprep.mubr.msk.bf16.mxu1 %vm940_vm0, %v939_v0  ;;  %v775_v6 = vld [vmem:[#allocation7 + $0x30] sm:$0xff]   ;;  %v770_v7 = vld [vmem:[#allocation5 + $0x18] sm:$0xff]   ;;  %v772_v9 = vld [vmem:[#allocation5 + $0x8] sm:$0xff]   ;;  %s514_s29 = sshll.u32 %s268_s30, 4  ;;  %s1116_s7 = scalar_lea.hbm %s1164_s5, %s634_s12  ;;  %s1118_s29 = int_to_ptr.vmem [resolvable:$true] %s514_s29 }
  0x58   : > { %656 = vmatpush3.bf16.msra.mxu0 %v766_v1  ;;  %676 = vmatpush3.bf16.msra.mxu1 %v774_v4  ;;  %v771_v8 = vld [vmem:[#allocation5 + $0x10] sm:$0xff]   ;;  %v773_v10 = vld [vmem:[#allocation5] sm:$0xff]   ;;  %v270_v11 = vld [vmem:[%s1094_s17] sm:$0xf]  ;;  %s501_s9 = scalar_lea.sflag [#allocation4], %s1090_s13  ;;  %s864_s14 = scalar_lea.vmem %s1118_s29, 128 }
  0x59   : > { %657 = vmatprep.subr.bf16.mxu0 %v939_v0  ;;  %677 = vmatprep.subr.bf16.mxu1 %v939_v0  ;;  %v776_v12 = vld [vmem:[#allocation7 + $0x28] sm:$0xff]   ;;  %v777_v13 = vld [vmem:[#allocation7 + $0x20] sm:$0xff]   ;;  %v778_v14 = vld [vmem:[#allocation7 + $0x18] sm:$0xff]   ;;  %p865_p3 = scmp.ne.s32.totalorder %s1118_s29, %s864_s14  ;;  %p1180_p11 = scmp.ne.s32.totalorder %s1174_s23, 0 }
  0x5a   : > { %v779_v15 = vld [vmem:[#allocation7 + $0x10] sm:$0xff]   ;;  %v780_v16 = vld [vmem:[#allocation7 + $0x8] sm:$0xff]   ;;  %v781_v17 = vld [vmem:[#allocation7] sm:$0xff]   ;;  %s941_s22 = smov [#allocation8]  }
  0x5b   : > { %v615_v18 = vld [vmem:[%s1161_s2] ss:$0 sm:$0xff]  ;;  %p866_p1 = pnand %p865_p3, %p1180_p11  ;;  %s868_s16 = sshll.u32 %s941_s22, 4  ;;  %s869_s16 = int_to_ptr.vmem [resolvable:$false] %s868_s16 }
  0x5c   : > { %658 = vmatpush3.bf16.msra.mxu0 %v767_v2  ;;  %678 = vmatpush3.bf16.msra.mxu1 %v775_v6  ;;  %v624_v30 = vld [vmem:[%s1163_s4] ss:$0 sm:$0xff]  ;;  %s870_s17 = scalar_lea.vmem %s869_s16, 256  ;;  %p871_p6 = scmp.lt.s32.totalorder %s1118_s29, %s869_s16 }
  0x5d   : > { %659 = vmatprep.subr.bf16.mxu0 %v939_v0  ;;  %679 = vmatprep.subr.bf16.mxu1 %v939_v0  ;;  %p867_p2 = pneg %p866_p1  ;;  %p872_p12 = scmp.lt.s32.totalorder %s870_s17, %s864_s14 }
  0x5f   : > { %p873_p7 = por %p872_p12, %p871_p6 }
  0x60   : > { %660 = vmatpush3.bf16.msra.mxu0 %v768_v3  ;;  %680 = vmatpush3.bf16.msra.mxu1 %v776_v12 }
  0x61   : > { %661 = vmatprep.subr.bf16.mxu0 %v939_v0  ;;  %681 = vmatprep.subr.bf16.mxu1 %v939_v0  ;;  %p874_p9 = pnand %p873_p7, %p867_p2 }
  0x64   : > { %662 = vmatpush3.bf16.msra.mxu0 %v769_v5  ;;  %682 = vmatpush3.bf16.msra.mxu1 %v777_v13 }
  0x65   : > { %663 = vmatprep.subr.bf16.mxu0 %v939_v0  ;;  %683 = vmatprep.subr.bf16.mxu1 %v939_v0 }
  0x68   : > { %664 = vmatpush3.bf16.msra.mxu0 %v770_v7  ;;  %684 = vmatpush3.bf16.msra.mxu1 %v778_v14 }
  0x69   : > { %665 = vmatprep.subr.bf16.mxu0 %v939_v0  ;;  %685 = vmatprep.subr.bf16.mxu1 %v939_v0 }
  0x6c   : > { %666 = vmatpush3.bf16.msra.mxu0 %v771_v8  ;;  %686 = vmatpush3.bf16.msra.mxu1 %v779_v15 }
  0x6d   : > { %667 = vmatprep.subr.bf16.mxu0 %v939_v0  ;;  %687 = vmatprep.subr.bf16.mxu1 %v939_v0 }
  0x70   : > { %668 = vmatpush3.bf16.msra.mxu0 %v772_v9  ;;  %688 = vmatpush3.bf16.msra.mxu1 %v780_v16 }
  0x71   : > { %669 = vmatprep.subr.bf16.mxu0 %v939_v0  ;;  %689 = vmatprep.subr.bf16.mxu1 %v939_v0 }
  0x74   : > { %670 = vmatpush3.bf16.msra.mxu0 %v773_v10  ;;  %690 = vmatpush3.bf16.msra.mxu1 %v781_v17 }
  0x77   : > { %672 = vmatmul.mubr.bf16.vlgmr.msra.gmra.mxu0 %v270_v11 }
 0x137   : > { %v376_v19 = vpop.f32.mrf.mxu0 }
 0x138   : > { %v377_v20 = vadd.f32 %v615_v18, %v376_v19 }
 0x139   : > { %v673_v21 = vpop.f32.mrf.mxu0 }
 0x13a   : > { %v383_v22 = vmul.f32 0.70710677, %v377_v20  ;;  %v382_v26 = vmul.f32 0.5, %v377_v20 }
 0x13b   : > { %v379_v23 = vpop.f32.mrf.mxu0 }
 0x13c   : > { %782 = verf.f32 %v383_v22 }
 0x13d   : > { %v674_v24 = vpop.f32.mrf.mxu0 }
 0x149   : > { %v783_v25 = vpop.eup %782 }
 0x14a   : > { %v385_v27 = vadd.f32 1.0, %v783_v25 }
 0x14c   : > { %v386_v28 = vmul.f32 %v385_v27, %v382_v26 }
 0x14e   : > { %v387_v29 = vpack.c.bf16 %v386_v28, %v386_v28 }
 0x150   : > { %692 = vmatmul.mubr.bf16.vlgmr.msra.gmra.mxu1 %v387_v29 }
 0x210   : > { %v493_v31 = vpop.f32.mrf.mxu1 }
 0x211   : > { %v494_v32 = vadd.f32 %v624_v30, %v493_v31 }
 0x212   : > { %v693_v33 = vpop.f32.mrf.mxu1 }
 0x213   : > { %499 = vst [vmem:[%s268_s30] sm:$0xff] %v494_v32 }
 0x214   : > { %v496_v34 = vpop.f32.mrf.mxu1 }
 0x215   : > { %877 = shalt.err (!%p874_p9)
}
 0x216   : > { %s878_s24 = scalar_lea.hbm %s1116_s7, 128  ;;  %s882_s8 = scalar_lea.hbm %s1164_s5, 256 }
 0x217   : > { %p879_p13 = scmp.ne.s32.totalorder %s1116_s7, %s878_s24  ;;  %p883_p0 = scmp.lt.s32.totalorder %s1116_s7, %s1164_s5 }
 0x218   : > { %p884_p4 = scmp.lt.s32.totalorder %s882_s8, %s878_s24 }
 0x219   : > { %p880_p5 = pnand %p879_p13, %p1180_p11 }
 0x21a   : > { %p885_p8 = por %p884_p4, %p883_p0 }
 0x21b   : > { %p881_p10 = pneg %p880_p5 }
 0x21d   : > { %p886_p3 = pnand %p885_p8, %p881_p10 }
 0x21f   : > { %889 = shalt.err (!%p886_p3)
}
 0x220   : > { %705 = dma.vmem_to_hbm [thread:$0]  (%p1180_p11), %s1118_s29, 128, %s1116_s7, %s501_s9   ;;  %v694_v35 = vpop.f32.mrf.mxu1 }
 0x221 PF: > { %s526_s12 = sand.u32 1, %s920_s18   ;;  %p1181_p1 = scmp.ne.s32.totalorder %s1170_s25, 0 }
 0x222   : > { %p1182_p2 = scmp.ge.s32.totalorder %s932_s21, 2  ;;  %s527_s30 = scalar_lea.sflag [#allocation4], %s526_s12 }
 0x224   : > { %p719_p6 = pnand %p1182_p2, %p1181_p1 }
 0x226   : > { %p720_p12 = pneg %p719_p6 }
 0x228   : > { %915 = dma.done.wait (%p720_p12), %s527_s30, 128  }
 0x229   : > { %917 = vsyncadd (%p720_p12), %s527_s30, 4294967168  ;;  %p19_p7 = scmp.ge.s32.totalorder %s1044_s15, 4   ;;  %s1183_s18 = smov %s924_s19 }
 0x22a   : > { %s1184_s19 = smov %s928_s20  ;;  %s1185_s20 = smov %s1060_s27 }
 0x22b   : > { %s1186_s21 = smov %s1044_s15  ;;  %21 = sbr.rel (!%p19_p7) target bundleno = 6 (0x6), region = 93 }
 0x230   :  { %532 = vsyncpa [#allocation3], 1 }
 0x231   :  { %534 = vsyncpa [#allocation3 + $0x1], 1 }
 0x232   :  { %535 = vsyncpa [#allocation6], 1 }
 0x233   :  { %536 = vsyncpa [#allocation4], 1 }
 0x234   :  { %538 = vsyncpa [#allocation4 + $0x1], 1 }

</bundles_post_ra>
